<compile_context>
chip_gen: v7x
topology: tpu7x:2x2x1
jax: 0.10.0
libtpu: 0.0.40
codegen_flags: <defaults>
</compile_context>

<pallas_src>
import functools

import jax
import jax.numpy as jnp
from jax.experimental import pallas as pl
from jax.experimental.pallas import tpu as pltpu

_LANES = 128
_SUB = 8  # f32 vreg sublane count; per-core partial is (8, 128)


def _cdiv(a, b):
    return (a + b - 1) // b


def _round_up(x, m):
    return _cdiv(x, m) * m


def _sublane_multiple(dtype):
    # Minimum sublane granularity of a block for this dtype (fallback 8).
    return {4: 8, 2: 16, 1: 32}.get(jnp.dtype(dtype).itemsize, 8)


def _detect_tensorcores():
    """Best-effort TensorCores-per-chip query (2 on v7x, 1 on v5e/v6e)."""
    try:
        info = pltpu.get_tpu_info()
    except Exception:
        return 1
    for name in ("num_tensorcores", "tensorcore_count", "num_tensor_cores",
                 "num_cores", "core_count"):
        n = getattr(info, name, None)
        if isinstance(n, int) and n in (1, 2):
            return n
    return 1


def _loss_kernel(o_ref, f_ref, out_ref, *, mode, total_n, row_tile,
                 blocks_per_core, chunk_rows, first_pad_block, needs_mask):
    c = pl.program_id(0)   # TensorCore split (core-parallel when n_cores > 1)
    i = pl.program_id(1)   # per-core reduction steps ("arbitrary")
    blk = c * blocks_per_core + i
    block_elems = row_tile * _LANES
    n_chunks = row_tile // chunk_rows

    @pl.when(i == 0)
    def _():
        out_ref[...] = jnp.zeros_like(out_ref)

    def _values(o, f):
        if mode == "QLike":
            # true_fore = outputs / (forecast_y + 1e-4); term = tf - log(tf)
            of = o.astype(jnp.float32)
            x = f.astype(jnp.float32) + jnp.float32(1e-4)
            r = pl.reciprocal(x, approx=True)            # EUP slot
            r = r * (jnp.float32(2.0) - x * r)           # one Newton step
            tf = of * r
            return tf - jnp.log(tf)                      # log also on the EUP
        # nn.MSELoss(): (outputs - forecast_y)^2
        if o.dtype == jnp.bfloat16 and f.dtype == jnp.bfloat16:
            d = (o - f).astype(jnp.float32)              # one widen, not two
        else:
            d = o.astype(jnp.float32) - f.astype(jnp.float32)
        return d * d

    def _accumulate(mask_tail):
        def chunk_body(j):
            start = pl.multiple_of(j * chunk_rows, chunk_rows)
            o = o_ref[pl.ds(start, chunk_rows), :]
            f = f_ref[pl.ds(start, chunk_rows), :]
            val = _values(o, f)
            if mask_tail:
                # Only traced for the tail blocks of the QLike branch.
                row = jax.lax.broadcasted_iota(jnp.int32, (chunk_rows, _LANES), 0)
                lane = jax.lax.broadcasted_iota(jnp.int32, (chunk_rows, _LANES), 1)
                local = (start + row) * _LANES + lane
                rem = jnp.int32(total_n) - blk * jnp.int32(block_elems)
                val = jnp.where(local < rem, val, jnp.float32(0.0))
            # Vreg-shaped fold: pure VPU adds onto the resident (8,128) output.
            out_ref[...] += val.reshape(chunk_rows // _SUB, _SUB, _LANES).sum(axis=0)

        if n_chunks == 1:
            chunk_body(0)
        else:
            @pl.loop(0, n_chunks)
            def _(j):
                chunk_body(j)

    if needs_mask:
        @pl.when(blk < first_pad_block)
        def _():
            _accumulate(False)

        @pl.when(blk >= first_pad_block)
        def _():
            _accumulate(True)
    else:
        _accumulate(False)


def pallas_loss(outputs, forecast_y, *, mode="MSE", row_tile=2048, n_cores=None):
    """Pallas TPU port of GNNHAR.Loss.forward.

    mode == "QLike" reproduces the QLike branch, anything else -> MSE branch
    (mirrors `opt.loss`, a static config flag, not a tensor).
    """
    assert outputs.shape == forecast_y.shape
    total_n = int(outputs.size)
    assert total_n > 0
    if n_cores is None:
        n_cores = _detect_tensorcores()
    n_cores = max(int(n_cores), 1)

    sub = max(_sublane_multiple(outputs.dtype),
              _sublane_multiple(forecast_y.dtype))
    n_rows = _cdiv(total_n, _LANES)
    rows_per_core = _cdiv(n_rows, n_cores)

    # Big tiles (default 2048 rows = 1 MiB/input/buffer for f32) reach ~85% of
    # the HBM roofline; tiny inputs clamp down so padding stays negligible.
    chunk_base = 512  # rows per in-kernel compute chunk (bounds f32 temps)
    row_tile_eff = min(_round_up(row_tile, chunk_base),
                       _round_up(rows_per_core, sub))
    if row_tile_eff > chunk_base:
        row_tile_eff = _round_up(row_tile_eff, chunk_base)
        chunk_rows = chunk_base
    else:
        chunk_rows = row_tile_eff

    blocks_per_core = _cdiv(n_rows, n_cores * row_tile_eff)
    padded_rows = n_cores * blocks_per_core * row_tile_eff
    padded_n = padded_rows * _LANES
    block_elems = row_tile_eff * _LANES
    assert padded_n < 2 ** 31, "int32 index math inside the kernel"

    # The MSE branch never needs masking: both inputs are padded with the same
    # constant, so the padded difference is exactly zero.  QLike only masks in
    # the block(s) that can contain padding.
    needs_mask = (mode == "QLike") and (padded_n != total_n)
    first_pad_block = (total_n // block_elems) if needs_mask \
        else n_cores * blocks_per_core

    # Single pad per input, native dtype (no wrapper-side cast).  Pad value
    # 1.0 keeps the QLike math finite and makes the MSE pad contribution 0.
    def _prep(x):
        flat = x.reshape(-1)
        if padded_n != total_n:
            flat = jnp.pad(flat, (0, padded_n - total_n), constant_values=1.0)
        return flat.reshape(padded_rows, _LANES)

    o2d = _prep(outputs)
    f2d = _prep(forecast_y)

    kernel = functools.partial(
        _loss_kernel, mode=mode, total_n=total_n, row_tile=row_tile_eff,
        blocks_per_core=blocks_per_core, chunk_rows=chunk_rows,
        first_pad_block=first_pad_block, needs_mask=needs_mask)

    leading_sem = pltpu.CORE_PARALLEL if n_cores > 1 else pltpu.ARBITRARY

    partials = pl.pallas_call(
        kernel,
        out_shape=jax.ShapeDtypeStruct((n_cores * _SUB, _LANES), jnp.float32),
        grid_spec=pltpu.PrefetchScalarGridSpec(
            num_scalar_prefetch=0,
            grid=(n_cores, blocks_per_core),
            in_specs=[
                pl.BlockSpec((row_tile_eff, _LANES),
                             lambda c, i: (c * blocks_per_core + i, 0)),
                pl.BlockSpec((row_tile_eff, _LANES),
                             lambda c, i: (c * blocks_per_core + i, 0)),
            ],
            out_specs=pl.BlockSpec((_SUB, _LANES), lambda c, i: (c, 0)),
        ),
        compiler_params=pltpu.CompilerParams(
            # Real 2-way TensorCore split on v7x; plain reduction loop on
            # 1-TC chips.  VMEM: 2 inputs x 2 buffers x 1 MiB tile + ~few
            # hundred KiB of chunked f32 temps -- well under every default.
            dimension_semantics=(leading_sem, pltpu.ARBITRARY)),
    )(o2d, f2d)

    # Tiny final cross-lane reduction (n_cores*8*128 elems) outside the kernel.
    return jnp.sum(partials) / jnp.float32(total_n)


def _ref_loss(outputs, forecast_y, mode):
    o = outputs.astype(jnp.float32)
    f = forecast_y.astype(jnp.float32)
    if mode == "QLike":
        tf = o / (f + 1e-4)
        return jnp.mean(tf - jnp.log(tf))
    return jnp.mean((o - f) ** 2)


if __name__ == "__main__":
    key = jax.random.PRNGKey(0)
    ok = True
    # (shape, dtype, tol): aligned f32, ragged f32, bf16, and a bigger ragged
    # f32 case that exercises the multi-block grid + in-kernel chunk loop.
    cases = [
        ((2, 4, 16, 16), jnp.float32, 1e-5),
        ((3, 5, 7, 11), jnp.float32, 1e-5),
        ((2, 4, 16, 16), jnp.bfloat16, 2e-2),
        ((256, 33, 129), jnp.float32, 1e-5),
    ]
    for shape, dtype, tol in cases:
        key, k1, k2 = jax.random.split(key, 3)
        outputs = jax.random.uniform(k1, shape, jnp.float32, 0.1, 2.0).astype(dtype)
        forecast_y = jax.random.uniform(k2, shape, jnp.float32, 0.1, 2.0).astype(dtype)
        for mode in ("MSE", "QLike"):
            got = jax.block_until_ready(
                pallas_loss(outputs, forecast_y, mode=mode))
            ref = _ref_loss(outputs, forecast_y, mode)
            if not jnp.allclose(got, ref, rtol=tol, atol=tol):
                ok = False
                print(f"MISMATCH shape={shape} dtype={dtype} mode={mode}: "
                      f"got={got} ref={ref}")

    if ok:
        print("KERNEL_OK")
</pallas_src>

<mosaic_0001>
module attributes {stable_mosaic.version = 11 : i64} {
  func.func @_loss_kernel(%arg0: i32, %arg1: i32, %arg2: memref<16x128xf32, #tpu.memory_space<vmem>>, %arg3: memref<16x128xf32, #tpu.memory_space<vmem>>, %arg4: memref<8x128xf32, #tpu.memory_space<vmem>>) attributes {dimension_semantics = [#tpu.dimension_semantics<arbitrary>, #tpu.dimension_semantics<arbitrary>], iteration_bounds = array<i64: 1, 1>, scalar_prefetch = 0 : i64, scratch_operands = 0 : i64, tpu.core_type = #tpu.core_type<tc>, window_params = [{transform_indices = @transform_0, window_bounds = array<i64: 16, 128>}, {transform_indices = @transform_1, window_bounds = array<i64: 16, 128>}, {transform_indices = @transform_2, window_bounds = array<i64: 8, 128>}]} {
    %c0_i32 = arith.constant 0 : i32
    %0 = arith.cmpi eq, %arg1, %c0_i32 : i32
    %1 = arith.extui %0 : i1 to i32
    %c0_i32_0 = arith.constant 0 : i32
    %2 = arith.cmpi ne, %1, %c0_i32_0 : i32
    scf.if %2 {
      %cst_7 = arith.constant 0.000000e+00 : f32
      %15 = vector.broadcast %cst_7 : f32 to vector<8x128xf32>
      %c0_8 = arith.constant 0 : index
      %c0_9 = arith.constant 0 : index
      %16 = vector.load %arg4[%c0_8, %c0_9] : memref<8x128xf32, #tpu.memory_space<vmem>>, vector<8x128xf32>
      tpu.vector_store %arg4[%c0_8, %c0_9], %15 {strides = array<i32>} : memref<8x128xf32, #tpu.memory_space<vmem>>, vector<8x128xf32>,
    } else {
    }
    %c0_i32_1 = arith.constant 0 : i32
    %3 = tpu.assume_multiple %c0_i32_1, 16 : i32
    %4 = arith.index_cast %3 : i32 to index
    %c0 = arith.constant 0 : index
    %5 = vector.load %arg2[%4, %c0] : memref<16x128xf32, #tpu.memory_space<vmem>>, vector<16x128xf32>
    %6 = arith.index_cast %3 : i32 to index
    %c0_2 = arith.constant 0 : index
    %7 = vector.load %arg3[%6, %c0_2] : memref<16x128xf32, #tpu.memory_space<vmem>>, vector<16x128xf32>
    %8 = arith.subf %5, %7 : vector<16x128xf32>
    %9 = arith.mulf %8, %8 : vector<16x128xf32>
    %c0_3 = arith.constant 0 : index
    %c0_4 = arith.constant 0 : index
    %10 = vector.load %arg4[%c0_3, %c0_4] : memref<8x128xf32, #tpu.memory_space<vmem>>, vector<8x128xf32>
    %11 = vector.shape_cast %9 : vector<16x128xf32> to vector<2x8x128xf32>
    %cst = arith.constant dense<0.000000e+00> : vector<8x128xf32>
    %12 = vector.multi_reduction <add>, %11, %cst [0] : vector<2x8x128xf32> to vector<8x128xf32>
    %13 = arith.addf %10, %12 : vector<8x128xf32>
    %c0_5 = arith.constant 0 : index
    %c0_6 = arith.constant 0 : index
    %14 = vector.load %arg4[%c0_5, %c0_6] : memref<8x128xf32, #tpu.memory_space<vmem>>, vector<8x128xf32>
    tpu.vector_store %arg4[%c0_5, %c0_6], %13 {strides = array<i32>} : memref<8x128xf32, #tpu.memory_space<vmem>>, vector<8x128xf32>,
    return
  }
  func.func @transform_0(%arg0: i32, %arg1: i32) -> (i32, i32) {
    %c1_i32 = arith.constant 1 : i32
    %0 = arith.muli %arg0, %c1_i32 : i32
    %1 = arith.addi %0, %arg1 : i32
    %c0_i32 = arith.constant 0 : i32
    %c0_i32_0 = arith.constant 0 : i32
    return %1, %c0_i32 : i32, i32
  }
  func.func @transform_1(%arg0: i32, %arg1: i32) -> (i32, i32) {
    %c1_i32 = arith.constant 1 : i32
    %0 = arith.muli %arg0, %c1_i32 : i32
    %1 = arith.addi %0, %arg1 : i32
    %c0_i32 = arith.constant 0 : i32
    %c0_i32_0 = arith.constant 0 : i32
    return %1, %c0_i32 : i32, i32
  }
  func.func @transform_2(%arg0: i32, %arg1: i32) -> (i32, i32) {
    %c0_i32 = arith.constant 0 : i32
    %c0_i32_0 = arith.constant 0 : i32
    return %arg0, %c0_i32 : i32, i32
  }
}

</mosaic_0001>

<bundles_post_ra>
// kernel: tpu_custom_call.1
= control target key start
LH: loop header
LB: loop body
LE: loop exit
PB: predicated region body
PF: predicated region fallthrough
CT: control target
= control target key end

     0   :  { %7 = vsyncpa [#allocation3], 0  ;;  %s219_s0 = inlined_call_operand.hbm [shape: f32[16,128], index: 0, kind: input, shape index: {}]   ;;  %s220_s1 = inlined_call_operand.hbm [shape: f32[16,128], index: 1, kind: input, shape index: {}]   ;;  %s221_s2 = inlined_call_operand.hbm [shape: f32[8,128], index: 2, kind: output, shape index: {}]  }
   0x1   :  { %8 = vsyncpa [#allocation6], 0 }
   0x2   :  { %9 = vsyncpa [#allocation4], 0  ;;  %s163_s9 = smov [#allocation2]   ;;  %s91_s13 = scalar_lea.hbm %s219_s0, 256 }
   0x3   :  { %s19_s10 = sshll.u32 %s163_s9, 4  ;;  %p92_p0 = scmp.ne.s32.totalorder %s219_s0, %s91_s13  ;;  %s20_s10 = int_to_ptr.vmem [resolvable:$true] %s19_s10 }
   0x4   :  { %p95_p1 = scmp.lt.u32.totalorder %s91_s13, %s219_s0 }
   0x6   :  { %p97_p2 = pnand %p95_p1, %p92_p0 }
   0x8   :  { %100 = shalt.err (!%p97_p2)
}
   0x9   :  { %s101_s18 = scalar_lea.vmem %s20_s10, 256  ;;  %p106_p4 = scmp.lt.s32.totalorder %s20_s10, %s20_s10 }
   0xa   :  { %p102_p3 = scmp.ne.s32.totalorder %s20_s10, %s101_s18  ;;  %p107_p5 = scmp.lt.s32.totalorder %s101_s18, %s101_s18 }
   0xc   :  { %p108_p6 = por %p107_p5, %p106_p4 }
   0xe   :  { %p109_p7 = pnand %p108_p6, %p102_p3 }
  0x10   :  { %112 = shalt.err (!%p109_p7)
}
  0x11   :  { %s164_s19 = smov 128   ;;  %s165_s20 = smov 8  }
  0x12   :  { %25 = dma.hbm_to_vmem [thread:$0]  %s219_s0, 256, %s20_s10, [#allocation3], %s164_s19, %s164_s19, %s165_s20  }
  0x13   :  { %s166_s23 = smov [#allocation5]   ;;  %s113_s27 = scalar_lea.hbm %s220_s1, 256 }
  0x14   :  { %s35_s24 = sshll.u32 %s166_s23, 4  ;;  %p114_p8 = scmp.ne.s32.totalorder %s220_s1, %s113_s27  ;;  %s36_s24 = int_to_ptr.vmem [resolvable:$true] %s35_s24 }
  0x15   :  { %p117_p9 = scmp.lt.u32.totalorder %s113_s27, %s220_s1 }
  0x17   :  { %p119_p10 = pnand %p117_p9, %p114_p8 }
  0x19   :  { %122 = shalt.err (!%p119_p10)
}
  0x1a   :  { %s123_s4 = scalar_lea.vmem %s36_s24, 256  ;;  %p128_p12 = scmp.lt.s32.totalorder %s36_s24, %s36_s24 }
  0x1b   :  { %p124_p11 = scmp.ne.s32.totalorder %s36_s24, %s123_s4  ;;  %p129_p13 = scmp.lt.s32.totalorder %s123_s4, %s123_s4 }
  0x1d   :  { %p130_p0 = por %p129_p13, %p128_p12 }
  0x1f   :  { %p131_p1 = pnand %p130_p0, %p124_p11 }
  0x21   :  { %134 = shalt.err (!%p131_p1)
}
  0x22   :  { %41 = dma.hbm_to_vmem [thread:$0]  %s220_s1, 256, %s36_s24, [#allocation6], %s164_s19, %s164_s19, %s165_s20  }
  0x23   :  { %157 = dma.done.wait [#allocation3], 256  }
  0x24   :  { %158 = vsyncadd [#allocation3], 4294967040 }
  0x25   :  { %159 = dma.done.wait [#allocation6], 256  }
  0x26   :  { %160 = vsyncadd [#allocation6], 4294967040  ;;  %v57_v0 = vld [vmem:[#allocation2] sm:$0xff]  ;;  %v58_v1 = vld [vmem:[#allocation2 + $0x8] sm:$0xff]  ;;  %s167_s6 = smov [#allocation7]  }
  0x27   :  { %v59_v2 = vld [vmem:[#allocation5] sm:$0xff]  ;;  %v60_v3 = vld [vmem:[#allocation5 + $0x8] sm:$0xff]  ;;  %s75_s7 = sshll.u32 %s167_s6, 4  ;;  %s76_s7 = int_to_ptr.vmem [resolvable:$true] %s75_s7 }
  0x28   :  { %v61_v4 = vsub.f32 %v57_v0, %v59_v2  ;;  %v62_v5 = vsub.f32 %v58_v1, %v60_v3  ;;  %s135_s8 = scalar_lea.vmem %s76_s7, 128  ;;  %p140_p3 = scmp.lt.s32.totalorder %s76_s7, %s76_s7 }
  0x29   :  { %p136_p2 = scmp.ne.s32.totalorder %s76_s7, %s135_s8  ;;  %p141_p4 = scmp.lt.s32.totalorder %s135_s8, %s135_s8 }
  0x2a   :  { %v63_v6 = vmul.f32 %v61_v4, %v61_v4  ;;  %v64_v7 = vmul.f32 %v62_v5, %v62_v5 }
  0x2b   :  { %p142_p5 = por %p141_p4, %p140_p3 }
  0x2c   :  { %v66_v8 = vadd.f32 %v64_v7, %v63_v6 }
  0x2d   :  { %p143_p6 = pnand %p142_p5, %p136_p2 }
  0x2e   :  { %68 = vst [vmem:[#allocation7] sm:$0xff] %v66_v8 }
  0x2f   :  { %146 = shalt.err (!%p143_p6)
}
  0x30   :  { %s147_s10 = scalar_lea.hbm %s221_s2, 128 }
  0x31   :  { %p148_p7 = scmp.ne.s32.totalorder %s221_s2, %s147_s10  ;;  %p151_p8 = scmp.lt.u32.totalorder %s147_s10, %s221_s2 }
  0x33   :  { %p153_p9 = pnand %p151_p8, %p148_p7 }
  0x35   :  { %156 = shalt.err (!%p153_p9)
}
  0x36   :  { %78 = dma.vmem_to_hbm [thread:$0]  %s76_s7, 128, %s221_s2, [#allocation4]  }
  0x37   :  { %161 = dma.done.wait [#allocation4], 128  }
  0x38   :  { %162 = vsyncadd [#allocation4], 4294967168 }
  0x39   :  { %82 = vsyncpa [#allocation3], 1 }
  0x3a   :  { %83 = vsyncpa [#allocation6], 1 }
  0x3b   :  { %84 = vsyncpa [#allocation4], 1 }

</bundles_post_ra>
